<compile_context>
chip_gen: v5e
topology: v5e:2x2
jax: 0.10.0
libtpu: 0.0.40
codegen_flags: <defaults>
</compile_context>

<pallas_src>
import functools

import jax
import jax.numpy as jnp
from jax.experimental import pallas as pl
from jax.experimental.pallas import tpu as pltpu


def _round_up(x: int, m: int) -> int:
    return ((x + m - 1) // m) * m


def mlp_kernel(x_ref, w1_ref, b1_ref, w2_ref, b2_ref, pred_ref, hid_ref):
    # fc1 (MXU, bf16 inputs -> f32 accumulate) + bias + ReLU (VPU, f32)
    h = jnp.dot(x_ref[...], w1_ref[...], preferred_element_type=jnp.float32)
    h = jnp.maximum(h + b1_ref[...], 0.0)            # (TM, Hp) + (1, Hp)
    hid_ref[...] = h.astype(hid_ref.dtype)           # bf16 writeback ("out")
    # fc2 (MXU, f32 accumulate) + bias
    p = jnp.dot(h.astype(w2_ref.dtype), w2_ref[...],
                preferred_element_type=jnp.float32)
    pred_ref[...] = (p + b2_ref[...]).astype(pred_ref.dtype)


def _pick_row_tiling(n: int, tm: int):
    """Return (n_padded, row_tile); grid = n_padded // row_tile, preferring >= 2 steps."""
    n16 = _round_up(n, 16)                     # bf16 sublane pack; no 256-row padding
    if n16 >= 2 * tm:
        return _round_up(n, tm), tm            # many full tiles (< 1 tile of padding)
    if n16 >= 32:
        half = _round_up((n16 + 1) // 2, 16)   # 2 tiles -> both v7x TensorCores busy
        return 2 * half, half
    return n16, n16                            # tiny batch: single 16-row tile


@functools.partial(jax.jit, static_argnames=("tm", "single_buffer_weights"))
def feedforward_mlp(x, w1_t, b1, w2_t, b2, *, tm=256, single_buffer_weights=True):
    """Pallas equivalent of FeedForwardNeuralNet.forward -> (pred, hidden).

    x: (N, D) f32; w1_t: (D, H); b1: (H,); w2_t: (H, O); b2: (O,)
    (weights pre-transposed so the kernel computes x @ W + b, matching nn.Linear).
    Outputs are bf16 (hidden is re-quantized to bf16 before fc2 in any case).
    """
    n, d = x.shape
    h = w1_t.shape[1]
    o = w2_t.shape[1]

    # Lane/sublane-friendly padded dims.
    d_p = _round_up(d, 128)
    h_p = _round_up(h, 128)
    o_p = _round_up(o, 128)
    n_p, tm_r = _pick_row_tiling(n, tm)

    # Pad + cast at the wrapper boundary (bf16 MXU operands, f32 biases).
    x_p = jnp.pad(x, ((0, n_p - n), (0, d_p - d))).astype(jnp.bfloat16)
    w1_p = jnp.pad(w1_t, ((0, d_p - d), (0, h_p - h))).astype(jnp.bfloat16)
    w2_p = jnp.pad(w2_t, ((0, h_p - h), (0, o_p - o))).astype(jnp.bfloat16)
    b1_p = jnp.pad(b1.reshape(1, -1), ((0, 0), (0, h_p - h))).astype(jnp.float32)
    b2_p = jnp.pad(b2.reshape(1, -1), ((0, 0), (0, o_p - o))).astype(jnp.float32)

    grid = (n_p // tm_r,)

    # Resident operands (constant index_map): optionally single-buffered for VMEM headroom.
    res_kwargs = dict(pipeline_mode=pl.Buffered(1)) if single_buffer_weights else {}

    in_specs = [
        pl.BlockSpec((tm_r, d_p), lambda i: (i, 0)),               # x tile streams over batch
        pl.BlockSpec((d_p, h_p), lambda i: (0, 0), **res_kwargs),  # W1 resident in VMEM
        pl.BlockSpec((1, h_p), lambda i: (0, 0), **res_kwargs),    # b1 resident
        pl.BlockSpec((h_p, o_p), lambda i: (0, 0), **res_kwargs),  # W2 resident
        pl.BlockSpec((1, o_p), lambda i: (0, 0), **res_kwargs),    # b2 resident
    ]
    out_specs = [
        pl.BlockSpec((tm_r, o_p), lambda i: (i, 0)),               # pred tile (bf16)
        pl.BlockSpec((tm_r, h_p), lambda i: (i, 0)),               # hidden tile (bf16)
    ]

    # VMEM budget: weights (once) + double-buffered streaming tiles, generous margin;
    # clamped to v7x physical 64 MiB.
    weight_bytes = 2 * (d_p * h_p + h_p * o_p) + 4 * (h_p + o_p)
    tile_bytes = 2 * tm_r * (d_p + h_p + o_p)
    vmem_limit = min(max(2 * weight_bytes + 4 * tile_bytes + (8 << 20), 32 << 20), 64 << 20)

    cost = pl.CostEstimate(
        flops=2 * n_p * (d_p * h_p + h_p * o_p),
        transcendentals=0,
        bytes_accessed=(2 * (n_p * d_p + d_p * h_p + h_p * o_p)   # bf16 inputs
                        + 4 * (h_p + o_p)                          # f32 biases
                        + 2 * n_p * (h_p + o_p)),                  # bf16 outputs
    )

    pred_p, hid_p = pl.pallas_call(
        mlp_kernel,
        grid=grid,
        in_specs=in_specs,
        out_specs=out_specs,
        out_shape=(
            jax.ShapeDtypeStruct((n_p, o_p), jnp.bfloat16),  # pred (padded, bf16)
            jax.ShapeDtypeStruct((n_p, h_p), jnp.bfloat16),  # hidden (padded, bf16)
        ),
        compiler_params=pltpu.CompilerParams(
            dimension_semantics=("parallel",),
            vmem_limit_bytes=int(vmem_limit),
        ),
        cost_estimate=cost,
    )(x_p, w1_p, b1_p, w2_p, b2_p)

    # TODO(synk): for tiny real O (=2), measure a narrow (non-128-padded) pred store vs.
    # the lane-dense bf16 block; it cuts writeback 64x but uses the masked-store path.
    # Slice the real rows/columns back out (padding contributed nothing to them).
    return pred_p[:n, :o], hid_p[:n, :h]


def reference(x, w1_t, b1, w2_t, b2):
    # Same bf16-at-the-boundary quantization as the kernel, f32 accumulate, bf16 outputs.
    xb = x.astype(jnp.bfloat16).astype(jnp.float32)
    w1b = w1_t.astype(jnp.bfloat16).astype(jnp.float32)
    w2b = w2_t.astype(jnp.bfloat16).astype(jnp.float32)
    hid = jnp.maximum(xb @ w1b + b1.reshape(1, -1), 0.0)
    hid_b = hid.astype(jnp.bfloat16)
    pred = hid_b.astype(jnp.float32) @ w2b + b2.reshape(1, -1)
    return pred.astype(jnp.bfloat16), hid_b


if __name__ == "__main__":
    # Small shapes consistent with the module: input_size -> hidden_dim -> 2
    batch = 8
    input_size = 256
    hidden_dim = 64
    output_dim = 2

    key = jax.random.PRNGKey(0)
    kx, kw1, kb1, kw2, kb2 = jax.random.split(key, 5)

    x = jax.random.normal(kx, (batch, input_size), dtype=jnp.float32)

    # nn.Linear-style uniform(-1/sqrt(fan_in), 1/sqrt(fan_in)) init.
    bound1 = 1.0 / jnp.sqrt(jnp.float32(input_size))
    w1_t = jax.random.uniform(kw1, (input_size, hidden_dim), jnp.float32, -bound1, bound1)
    b1 = jax.random.uniform(kb1, (hidden_dim,), jnp.float32, -bound1, bound1)

    bound2 = 1.0 / jnp.sqrt(jnp.float32(hidden_dim))
    w2_t = jax.random.uniform(kw2, (hidden_dim, output_dim), jnp.float32, -bound2, bound2)
    b2 = jax.random.uniform(kb2, (output_dim,), jnp.float32, -bound2, bound2)

    try:
        pred, hidden = feedforward_mlp(x, w1_t, b1, w2_t, b2, tm=256)
        jax.block_until_ready((pred, hidden))
    except Exception:
        # Fallback: this JAX build may not accept pipeline_mode on pallas_call BlockSpecs;
        # rerun with default double-buffered resident weights (identical math).
        pred, hidden = feedforward_mlp(x, w1_t, b1, w2_t, b2, tm=256,
                                       single_buffer_weights=False)
        jax.block_until_ready((pred, hidden))

    pred_ref, hidden_ref = reference(x, w1_t, b1, w2_t, b2)
    assert pred.shape == (batch, output_dim) and pred.dtype == jnp.bfloat16
    assert hidden.shape == (batch, hidden_dim) and hidden.dtype == jnp.bfloat16
    assert jnp.allclose(pred.astype(jnp.float32), pred_ref.astype(jnp.float32),
                        atol=2e-2, rtol=2e-2)
    assert jnp.allclose(hidden.astype(jnp.float32), hidden_ref.astype(jnp.float32),
                        atol=2e-2, rtol=2e-2)

    print("KERNEL_OK")
</pallas_src>

<mosaic_0001>
module attributes {stable_mosaic.version = 11 : i64} {
  func.func @mlp_kernel(%arg0: i32, %arg1: memref<16x256xbf16, #tpu.memory_space<vmem>>, %arg2: memref<256x128xbf16, #tpu.memory_space<vmem>>, %arg3: memref<1x128xf32, #tpu.memory_space<vmem>>, %arg4: memref<128x128xbf16, #tpu.memory_space<vmem>>, %arg5: memref<1x128xf32, #tpu.memory_space<vmem>>, %arg6: memref<16x128xbf16, #tpu.memory_space<vmem>>, %arg7: memref<16x128xbf16, #tpu.memory_space<vmem>>) attributes {dimension_semantics = [#tpu.dimension_semantics<parallel>], iteration_bounds = array<i64: 1>, scalar_prefetch = 0 : i64, scratch_operands = 0 : i64, tpu.core_type = #tpu.core_type<tc>, window_params = [{transform_indices = @transform_0, window_bounds = array<i64: 16, 256>}, {pipeline_mode = #tpu.pipeline_mode<synchronous>, transform_indices = @transform_1, window_bounds = array<i64: 256, 128>}, {pipeline_mode = #tpu.pipeline_mode<synchronous>, transform_indices = @transform_2, window_bounds = array<i64: 1, 128>}, {pipeline_mode = #tpu.pipeline_mode<synchronous>, transform_indices = @transform_3, window_bounds = array<i64: 128, 128>}, {pipeline_mode = #tpu.pipeline_mode<synchronous>, transform_indices = @transform_4, window_bounds = array<i64: 1, 128>}, {transform_indices = @transform_5, window_bounds = array<i64: 16, 128>}, {transform_indices = @transform_6, window_bounds = array<i64: 16, 128>}]} {
    %c0 = arith.constant 0 : index
    %c0_0 = arith.constant 0 : index
    %0 = vector.load %arg1[%c0, %c0_0] : memref<16x256xbf16, #tpu.memory_space<vmem>>, vector<16x256xbf16>
    %c0_1 = arith.constant 0 : index
    %c0_2 = arith.constant 0 : index
    %1 = vector.load %arg2[%c0_1, %c0_2] : memref<256x128xbf16, #tpu.memory_space<vmem>>, vector<256x128xbf16>
    %cst = arith.constant dense<0.000000e+00> : vector<16x128xf32>
    %2 = tpu.matmul %0, %1, %cst {dimension_numbers = #tpu.dot_dimension_numbers<[1], [0], [0], [1], [0, 0, 1, 1], [], []>} : vector<16x256xbf16>, vector<256x128xbf16>, vector<16x128xf32> -> vector<16x128xf32>
    %c0_3 = arith.constant 0 : index
    %c0_4 = arith.constant 0 : index
    %3 = vector.load %arg3[%c0_3, %c0_4] : memref<1x128xf32, #tpu.memory_space<vmem>>, vector<1x128xf32>
    %4 = vector.broadcast %3 : vector<1x128xf32> to vector<16x128xf32>
    %5 = arith.addf %2, %4 : vector<16x128xf32>
    %cst_5 = arith.constant 0.000000e+00 : f32
    %6 = vector.broadcast %cst_5 : f32 to vector<16x128xf32>
    %7 = arith.maximumf %5, %6 : vector<16x128xf32>
    %8 = arith.truncf %7 : vector<16x128xf32> to vector<16x128xbf16>
    %c0_6 = arith.constant 0 : index
    %c0_7 = arith.constant 0 : index
    %9 = vector.load %arg7[%c0_6, %c0_7] : memref<16x128xbf16, #tpu.memory_space<vmem>>, vector<16x128xbf16>
    tpu.vector_store %arg7[%c0_6, %c0_7], %8 {strides = array<i32>} : memref<16x128xbf16, #tpu.memory_space<vmem>>, vector<16x128xbf16>,
    %10 = arith.truncf %7 : vector<16x128xf32> to vector<16x128xbf16>
    %c0_8 = arith.constant 0 : index
    %c0_9 = arith.constant 0 : index
    %11 = vector.load %arg4[%c0_8, %c0_9] : memref<128x128xbf16, #tpu.memory_space<vmem>>, vector<128x128xbf16>
    %cst_10 = arith.constant dense<0.000000e+00> : vector<16x128xf32>
    %12 = tpu.matmul %10, %11, %cst_10 {dimension_numbers = #tpu.dot_dimension_numbers<[1], [0], [0], [1], [0, 0, 1, 1], [], []>} : vector<16x128xbf16>, vector<128x128xbf16>, vector<16x128xf32> -> vector<16x128xf32>
    %c0_11 = arith.constant 0 : index
    %c0_12 = arith.constant 0 : index
    %13 = vector.load %arg5[%c0_11, %c0_12] : memref<1x128xf32, #tpu.memory_space<vmem>>, vector<1x128xf32>
    %14 = vector.broadcast %13 : vector<1x128xf32> to vector<16x128xf32>
    %15 = arith.addf %12, %14 : vector<16x128xf32>
    %16 = arith.truncf %15 : vector<16x128xf32> to vector<16x128xbf16>
    %c0_13 = arith.constant 0 : index
    %c0_14 = arith.constant 0 : index
    %17 = vector.load %arg6[%c0_13, %c0_14] : memref<16x128xbf16, #tpu.memory_space<vmem>>, vector<16x128xbf16>
    tpu.vector_store %arg6[%c0_13, %c0_14], %16 {strides = array<i32>} : memref<16x128xbf16, #tpu.memory_space<vmem>>, vector<16x128xbf16>,
    return
  }
  func.func @transform_0(%arg0: i32) -> (i32, i32) {
    %c0_i32 = arith.constant 0 : i32
    %c0_i32_0 = arith.constant 0 : i32
    return %arg0, %c0_i32 : i32, i32
  }
  func.func @transform_1(%arg0: i32) -> (i32, i32) {
    %c0_i32 = arith.constant 0 : i32
    %c0_i32_0 = arith.constant 0 : i32
    %c0_i32_1 = arith.constant 0 : i32
    return %c0_i32, %c0_i32_0 : i32, i32
  }
  func.func @transform_2(%arg0: i32) -> (i32, i32) {
    %c0_i32 = arith.constant 0 : i32
    %c0_i32_0 = arith.constant 0 : i32
    %c0_i32_1 = arith.constant 0 : i32
    return %c0_i32, %c0_i32_0 : i32, i32
  }
  func.func @transform_3(%arg0: i32) -> (i32, i32) {
    %c0_i32 = arith.constant 0 : i32
    %c0_i32_0 = arith.constant 0 : i32
    %c0_i32_1 = arith.constant 0 : i32
    return %c0_i32, %c0_i32_0 : i32, i32
  }
  func.func @transform_4(%arg0: i32) -> (i32, i32) {
    %c0_i32 = arith.constant 0 : i32
    %c0_i32_0 = arith.constant 0 : i32
    %c0_i32_1 = arith.constant 0 : i32
    return %c0_i32, %c0_i32_0 : i32, i32
  }
  func.func @transform_5(%arg0: i32) -> (i32, i32) {
    %c0_i32 = arith.constant 0 : i32
    %c0_i32_0 = arith.constant 0 : i32
    return %arg0, %c0_i32 : i32, i32
  }
  func.func @transform_6(%arg0: i32) -> (i32, i32) {
    %c0_i32 = arith.constant 0 : i32
    %c0_i32_0 = arith.constant 0 : i32
    return %arg0, %c0_i32 : i32, i32
  }
}

module attributes {stable_mosaic.version = 11 : i64} {
  func.func @mlp_kernel(%arg0: i32, %arg1: memref<16x256xbf16, #tpu.memory_space<vmem>>, %arg2: memref<256x128xbf16, #tpu.memory_space<vmem>>, %arg3: memref<1x128xf32, #tpu.memory_space<vmem>>, %arg4: memref<128x128xbf16, #tpu.memory_space<vmem>>, %arg5: memref<1x128xf32, #tpu.memory_space<vmem>>, %arg6: memref<16x128xbf16, #tpu.memory_space<vmem>>, %arg7: memref<16x128xbf16, #tpu.memory_space<vmem>>) attributes {dimension_semantics = [#tpu.dimension_semantics<parallel>], iteration_bounds = array<i64: 1>, scalar_prefetch = 0 : i64, scratch_operands = 0 : i64, tpu.core_type = #tpu.core_type<tc>, window_params = [{transform_indices = @transform_0, window_bounds = array<i64: 16, 256>}, {pipeline_mode = #tpu.pipeline_mode<synchronous>, transform_indices = @transform_1, window_bounds = array<i64: 256, 128>}, {pipeline_mode = #tpu.pipeline_mode<synchronous>, transform_indices = @transform_2, window_bounds = array<i64: 1, 128>}, {pipeline_mode = #tpu.pipeline_mode<synchronous>, transform_indices = @transform_3, window_bounds = array<i64: 128, 128>}, {pipeline_mode = #tpu.pipeline_mode<synchronous>, transform_indices = @transform_4, window_bounds = array<i64: 1, 128>}, {transform_indices = @transform_5, window_bounds = array<i64: 16, 128>}, {transform_indices = @transform_6, window_bounds = array<i64: 16, 128>}]} {
    %c0 = arith.constant 0 : index
    %c0_0 = arith.constant 0 : index
    %0 = vector.load %arg1[%c0, %c0_0] : memref<16x256xbf16, #tpu.memory_space<vmem>>, vector<16x256xbf16>
    %c0_1 = arith.constant 0 : index
    %c0_2 = arith.constant 0 : index
    %1 = vector.load %arg2[%c0_1, %c0_2] : memref<256x128xbf16, #tpu.memory_space<vmem>>, vector<256x128xbf16>
    %cst = arith.constant dense<0.000000e+00> : vector<16x128xf32>
    %2 = tpu.matmul %0, %1, %cst {dimension_numbers = #tpu.dot_dimension_numbers<[1], [0], [0], [1], [0, 0, 1, 1], [], []>} : vector<16x256xbf16>, vector<256x128xbf16>, vector<16x128xf32> -> vector<16x128xf32>
    %c0_3 = arith.constant 0 : index
    %c0_4 = arith.constant 0 : index
    %3 = vector.load %arg3[%c0_3, %c0_4] : memref<1x128xf32, #tpu.memory_space<vmem>>, vector<1x128xf32>
    %4 = vector.broadcast %3 : vector<1x128xf32> to vector<16x128xf32>
    %5 = arith.addf %2, %4 : vector<16x128xf32>
    %cst_5 = arith.constant 0.000000e+00 : f32
    %6 = vector.broadcast %cst_5 : f32 to vector<16x128xf32>
    %7 = arith.maximumf %5, %6 : vector<16x128xf32>
    %8 = arith.truncf %7 : vector<16x128xf32> to vector<16x128xbf16>
    %c0_6 = arith.constant 0 : index
    %c0_7 = arith.constant 0 : index
    %9 = vector.load %arg7[%c0_6, %c0_7] : memref<16x128xbf16, #tpu.memory_space<vmem>>, vector<16x128xbf16>
    tpu.vector_store %arg7[%c0_6, %c0_7], %8 {strides = array<i32>} : memref<16x128xbf16, #tpu.memory_space<vmem>>, vector<16x128xbf16>,
    %10 = arith.truncf %7 : vector<16x128xf32> to vector<16x128xbf16>
    %c0_8 = arith.constant 0 : index
    %c0_9 = arith.constant 0 : index
    %11 = vector.load %arg4[%c0_8, %c0_9] : memref<128x128xbf16, #tpu.memory_space<vmem>>, vector<128x128xbf16>
    %cst_10 = arith.constant dense<0.000000e+00> : vector<16x128xf32>
    %12 = tpu.matmul %10, %11, %cst_10 {dimension_numbers = #tpu.dot_dimension_numbers<[1], [0], [0], [1], [0, 0, 1, 1], [], []>} : vector<16x128xbf16>, vector<128x128xbf16>, vector<16x128xf32> -> vector<16x128xf32>
    %c0_11 = arith.constant 0 : index
    %c0_12 = arith.constant 0 : index
    %13 = vector.load %arg5[%c0_11, %c0_12] : memref<1x128xf32, #tpu.memory_space<vmem>>, vector<1x128xf32>
    %14 = vector.broadcast %13 : vector<1x128xf32> to vector<16x128xf32>
    %15 = arith.addf %12, %14 : vector<16x128xf32>
    %16 = arith.truncf %15 : vector<16x128xf32> to vector<16x128xbf16>
    %c0_13 = arith.constant 0 : index
    %c0_14 = arith.constant 0 : index
    %17 = vector.load %arg6[%c0_13, %c0_14] : memref<16x128xbf16, #tpu.memory_space<vmem>>, vector<16x128xbf16>
    tpu.vector_store %arg6[%c0_13, %c0_14], %16 {strides = array<i32>} : memref<16x128xbf16, #tpu.memory_space<vmem>>, vector<16x128xbf16>,
    return
  }
  func.func @transform_0(%arg0: i32) -> (i32, i32) {
    %c0_i32 = arith.constant 0 : i32
    %c0_i32_0 = arith.constant 0 : i32
    return %arg0, %c0_i32 : i32, i32
  }
  func.func @transform_1(%arg0: i32) -> (i32, i32) {
    %c0_i32 = arith.constant 0 : i32
    %c0_i32_0 = arith.constant 0 : i32
    %c0_i32_1 = arith.constant 0 : i32
    return %c0_i32, %c0_i32_0 : i32, i32
  }
  func.func @transform_2(%arg0: i32) -> (i32, i32) {
    %c0_i32 = arith.constant 0 : i32
    %c0_i32_0 = arith.constant 0 : i32
    %c0_i32_1 = arith.constant 0 : i32
    return %c0_i32, %c0_i32_0 : i32, i32
  }
  func.func @transform_3(%arg0: i32) -> (i32, i32) {
    %c0_i32 = arith.constant 0 : i32
    %c0_i32_0 = arith.constant 0 : i32
    %c0_i32_1 = arith.constant 0 : i32
    return %c0_i32, %c0_i32_0 : i32, i32
  }
  func.func @transform_4(%arg0: i32) -> (i32, i32) {
    %c0_i32 = arith.constant 0 : i32
    %c0_i32_0 = arith.constant 0 : i32
    %c0_i32_1 = arith.constant 0 : i32
    return %c0_i32, %c0_i32_0 : i32, i32
  }
  func.func @transform_5(%arg0: i32) -> (i32, i32) {
    %c0_i32 = arith.constant 0 : i32
    %c0_i32_0 = arith.constant 0 : i32
    return %arg0, %c0_i32 : i32, i32
  }
  func.func @transform_6(%arg0: i32) -> (i32, i32) {
    %c0_i32 = arith.constant 0 : i32
    %c0_i32_0 = arith.constant 0 : i32
    return %arg0, %c0_i32 : i32, i32
  }
}

</mosaic_0001>

<bundles_post_ra>
// kernel: feedforward_mlp.1
= control target key start
LH: loop header
LB: loop body
LE: loop exit
PB: predicated region body
PF: predicated region fallthrough
CT: control target
= control target key end

     0   :  { %s573_s1 = inlined_call_operand.vmem [shape: bf16[256,128], index: 1, kind: input, shape index: {}]   ;;  %s574_s3 = inlined_call_operand.vmem [shape: bf16[128,128], index: 3, kind: input, shape index: {}]   ;;  %s575_s2 = inlined_call_operand.vmem [shape: f32[1,128], index: 2, kind: input, shape index: {}]   ;;  %s576_s0 = inlined_call_operand.vmem [shape: bf16[16,256], index: 0, kind: input, shape index: {}]   ;;  %s577_s4 = inlined_call_operand.vmem [shape: f32[1,128], index: 4, kind: input, shape index: {}]   ;;  %s578_s6 = inlined_call_operand.vmem [shape: bf16[16,128], index: 6, kind: output, shape index: {1}]   ;;  %s579_s5 = inlined_call_operand.vmem [shape: bf16[16,128], index: 5, kind: output, shape index: {0}]  }
   0x1   :  { %v413_v0 = vld [vmem:[%s573_s1 + $0x38] sm:$0xff]  ;;  %v412_v2 = vld [vmem:[%s573_s1 + $0x30] sm:$0xff]  ;;  %v411_v4 = vld [vmem:[%s573_s1 + $0x28] sm:$0xff] }
   0x2   :  { %v421_v1 = vld [vmem:[%s573_s1 + $0x78] sm:$0xff]  ;;  %166 = vmatpush.bf16.msra.mxu0 %v413_v0  ;;  %v420_v3 = vld [vmem:[%s573_s1 + $0x70] sm:$0xff]  ;;  %v419_v5 = vld [vmem:[%s573_s1 + $0x68] sm:$0xff] }
   0x3   :  { %180 = vmatpush.bf16.msra.mxu1 %v421_v1  ;;  %v429_v6 = vld [vmem:[%s574_s3 + $0x38] sm:$0xff]  ;;  %v428_v7 = vld [vmem:[%s574_s3 + $0x30] sm:$0xff]  ;;  %v410_v8 = vld [vmem:[%s573_s1 + $0x20] sm:$0xff] }
   0x4   :  { %274 = vmatpush.bf16.msra.mxu2 %v429_v6  ;;  %v418_v9 = vld [vmem:[%s573_s1 + $0x60] sm:$0xff]  ;;  %v427_v10 = vld [vmem:[%s574_s3 + $0x28] sm:$0xff]  ;;  %v409_v11 = vld [vmem:[%s573_s1 + $0x18] sm:$0xff] }
   0x5   :  { %v417_v12 = vld [vmem:[%s573_s1 + $0x58] sm:$0xff]  ;;  %v408_v13 = vld [vmem:[%s573_s1 + $0x10] sm:$0xff]  ;;  %v407_v15 = vld [vmem:[%s573_s1 + $0x8] sm:$0xff] }
   0x6   :  { %167 = vmatpush.bf16.msra.mxu0 %v412_v2  ;;  %v416_v14 = vld [vmem:[%s573_s1 + $0x50] sm:$0xff]  ;;  %v415_v16 = vld [vmem:[%s573_s1 + $0x48] sm:$0xff]  ;;  %v406_v17 = vld [vmem:[%s573_s1] sm:$0xff] }
   0x7   :  { %181 = vmatpush.bf16.msra.mxu1 %v420_v3  ;;  %v414_v18 = vld [vmem:[%s573_s1 + $0x40] sm:$0xff]  ;;  %v405_v20 = vld [vmem:[%s576_s0 + $0x4] sm:$0xf0]  ;;  %v304_v22 = vld [vmem:[%s576_s0 + $0x8] sm:$0xf0] }
   0x8   :  { %275 = vmatpush.bf16.msra.mxu2 %v428_v7  ;;  %v302_v19 = vld [vmem:[%s576_s0] sm:$0xf]  ;;  %v404_v21 = vld [vmem:[%s576_s0 + $0x4] sm:$0xf]  ;;  %v425_v26 = vld [vmem:[%s574_s3 + $0x18] sm:$0xff] }
   0x9   :  { %v303_v23 = vor.u32 %v405_v20, %v302_v19  ;;  %v307_v24 = vor.u32 %v404_v21, %v304_v22  ;;  %v426_v25 = vld [vmem:[%s574_s3 + $0x20] sm:$0xff]  ;;  %v424_v27 = vld [vmem:[%s574_s3 + $0x10] sm:$0xff]  ;;  %v423_v28 = vld [vmem:[%s574_s3 + $0x8] sm:$0xff] }
   0xa   :  { %168 = vmatpush.bf16.msra.mxu0 %v411_v4  ;;  %v422_v29 = vld [vmem:[%s574_s3] sm:$0xff] }
   0xb   :  { %182 = vmatpush.bf16.msra.mxu1 %v419_v5  ;;  %v440_v30 = vld [vmem:[%s575_s2] ss:$0 sm:$0xff] }
   0xc   :  { %276 = vmatpush.bf16.msra.mxu2 %v427_v10  ;;  %v441_v48 = vld [vmem:[%s577_s4] ss:$0 sm:$0xff] }
   0xe   :  { %169 = vmatpush.bf16.msra.mxu0 %v410_v8 }
   0xf   :  { %183 = vmatpush.bf16.msra.mxu1 %v418_v9 }
  0x10   :  { %277 = vmatpush.bf16.msra.mxu2 %v426_v25 }
  0x12   :  { %170 = vmatpush.bf16.msra.mxu0 %v409_v11 }
  0x13   :  { %184 = vmatpush.bf16.msra.mxu1 %v417_v12 }
  0x14   :  { %278 = vmatpush.bf16.msra.mxu2 %v425_v26 }
  0x16   :  { %171 = vmatpush.bf16.msra.mxu0 %v408_v13 }
  0x17   :  { %185 = vmatpush.bf16.msra.mxu1 %v416_v14 }
  0x18   :  { %279 = vmatpush.bf16.msra.mxu2 %v424_v27 }
  0x1a   :  { %172 = vmatpush.bf16.msra.mxu0 %v407_v15 }
  0x1b   :  { %186 = vmatpush.bf16.msra.mxu1 %v415_v16 }
  0x1c   :  { %280 = vmatpush.bf16.msra.mxu2 %v423_v28 }
  0x1e   :  { %173 = vmatpush.bf16.msra.mxu0 %v406_v17 }
  0x1f   :  { %187 = vmatpush.bf16.msra.mxu1 %v414_v18 }
  0x20   :  { %281 = vmatpush.bf16.msra.mxu2 %v422_v29 }
  0x21   :  { %174 = vmatmul.bf16.vlgmr.msra.gmra.mxu0 %v303_v23 }
  0x22   :  { %188 = vmatmul.bf16.vlgmr.msra.gmra.mxu1 %v307_v24 }
  0x9e   :  { %v175_v31 = vpop.f32.mrf.mxu0 }
  0x9f   :  { %v189_v32 = vpop.f32.mrf.mxu1  ;;  %v176_v33 = vadd.f32 %v440_v30, %v175_v31 }
  0xa1   :  { %v190_v34 = vadd.f32 %v189_v32, %v176_v33 }
  0xa3   :  { %v194_v36 = vmax.f32 %v190_v34, 0.0 }
  0xa5   :  { %v196_v40 = vpack.c.bf16 %v194_v36, %v194_v36 }
  0xa6   :  { %v177_v35 = vpop.f32.mrf.mxu0 }
  0xa7   :  { %v178_v37 = vadd.f32 %v440_v30, %v177_v35  ;;  %v191_v38 = vpop.f32.mrf.mxu1  ;;  %v222_v44 = vunpack.c.l.b16 %v196_v40 }
  0xa9   :  { %v192_v39 = vadd.f32 %v191_v38, %v178_v37 }
  0xab   :  { %v195_v41 = vmax.f32 %v192_v39, 0.0 }
  0xad   :  { %v197_v42 = vpack.c.bf16 %v195_v41, %v195_v41  ;;  %v433_v43 = vpack.c.bf16 %v195_v41, %v194_v36 }
  0xaf   :  { %434 = vst [vmem:[%s578_s6] sm:$0xff] %v433_v43   ;;  %v223_v45 = vunpack.c.l.b16 %v197_v42 }
  0xb1   :  { %v224_v46 = vpack.c.b16 %v223_v45, %v222_v44 }
  0xb3   :  { %282 = vmatmul.bf16.vlgmr.msra.gmra.mxu2 %v224_v46 }
 0x136   :  { %v283_v47 = vpop.f32.mrf.mxu2 }
 0x137   :  { %v284_v50 = vadd.f32 %v441_v48, %v283_v47 }
 0x13e   :  { %v285_v49 = vpop.f32.mrf.mxu2 }
 0x13f   :  { %v286_v51 = vadd.f32 %v441_v48, %v285_v49 }
 0x141   :  { %v438_v52 = vpack.c.bf16 %v286_v51, %v284_v50 }
 0x143   :  { %439 = vst [vmem:[%s579_s5] sm:$0xff] %v438_v52  }

// kernel: feedforward_mlp.1
= control target key start
LH: loop header
LB: loop body
LE: loop exit
PB: predicated region body
PF: predicated region fallthrough
CT: control target
= control target key end

     0   :  { %s573_s1 = inlined_call_operand.vmem [shape: bf16[256,128], index: 1, kind: input, shape index: {}]   ;;  %s574_s3 = inlined_call_operand.vmem [shape: bf16[128,128], index: 3, kind: input, shape index: {}]   ;;  %s575_s2 = inlined_call_operand.vmem [shape: f32[1,128], index: 2, kind: input, shape index: {}]   ;;  %s576_s0 = inlined_call_operand.vmem [shape: bf16[16,256], index: 0, kind: input, shape index: {}]   ;;  %s577_s4 = inlined_call_operand.vmem [shape: f32[1,128], index: 4, kind: input, shape index: {}]   ;;  %s578_s6 = inlined_call_operand.vmem [shape: bf16[16,128], index: 6, kind: output, shape index: {1}]   ;;  %s579_s5 = inlined_call_operand.vmem [shape: bf16[16,128], index: 5, kind: output, shape index: {0}]  }
   0x1   :  { %v413_v0 = vld [vmem:[%s573_s1 + $0x38] sm:$0xff]  ;;  %v412_v2 = vld [vmem:[%s573_s1 + $0x30] sm:$0xff]  ;;  %v411_v4 = vld [vmem:[%s573_s1 + $0x28] sm:$0xff] }
   0x2   :  { %v421_v1 = vld [vmem:[%s573_s1 + $0x78] sm:$0xff]  ;;  %166 = vmatpush.bf16.msra.mxu0 %v413_v0  ;;  %v420_v3 = vld [vmem:[%s573_s1 + $0x70] sm:$0xff]  ;;  %v419_v5 = vld [vmem:[%s573_s1 + $0x68] sm:$0xff] }
   0x3   :  { %180 = vmatpush.bf16.msra.mxu1 %v421_v1  ;;  %v429_v6 = vld [vmem:[%s574_s3 + $0x38] sm:$0xff]  ;;  %v428_v7 = vld [vmem:[%s574_s3 + $0x30] sm:$0xff]  ;;  %v410_v8 = vld [vmem:[%s573_s1 + $0x20] sm:$0xff] }
   0x4   :  { %274 = vmatpush.bf16.msra.mxu2 %v429_v6  ;;  %v418_v9 = vld [vmem:[%s573_s1 + $0x60] sm:$0xff]  ;;  %v427_v10 = vld [vmem:[%s574_s3 + $0x28] sm:$0xff]  ;;  %v409_v11 = vld [vmem:[%s573_s1 + $0x18] sm:$0xff] }
   0x5   :  { %v417_v12 = vld [vmem:[%s573_s1 + $0x58] sm:$0xff]  ;;  %v408_v13 = vld [vmem:[%s573_s1 + $0x10] sm:$0xff]  ;;  %v407_v15 = vld [vmem:[%s573_s1 + $0x8] sm:$0xff] }
   0x6   :  { %167 = vmatpush.bf16.msra.mxu0 %v412_v2  ;;  %v416_v14 = vld [vmem:[%s573_s1 + $0x50] sm:$0xff]  ;;  %v415_v16 = vld [vmem:[%s573_s1 + $0x48] sm:$0xff]  ;;  %v406_v17 = vld [vmem:[%s573_s1] sm:$0xff] }
   0x7   :  { %181 = vmatpush.bf16.msra.mxu1 %v420_v3  ;;  %v414_v18 = vld [vmem:[%s573_s1 + $0x40] sm:$0xff]  ;;  %v405_v20 = vld [vmem:[%s576_s0 + $0x4] sm:$0xf0]  ;;  %v304_v22 = vld [vmem:[%s576_s0 + $0x8] sm:$0xf0] }
   0x8   :  { %275 = vmatpush.bf16.msra.mxu2 %v428_v7  ;;  %v302_v19 = vld [vmem:[%s576_s0] sm:$0xf]  ;;  %v404_v21 = vld [vmem:[%s576_s0 + $0x4] sm:$0xf]  ;;  %v425_v26 = vld [vmem:[%s574_s3 + $0x18] sm:$0xff] }
   0x9   :  { %v303_v23 = vor.u32 %v405_v20, %v302_v19  ;;  %v307_v24 = vor.u32 %v404_v21, %v304_v22  ;;  %v426_v25 = vld [vmem:[%s574_s3 + $0x20] sm:$0xff]  ;;  %v424_v27 = vld [vmem:[%s574_s3 + $0x10] sm:$0xff]  ;;  %v423_v28 = vld [vmem:[%s574_s3 + $0x8] sm:$0xff] }
   0xa   :  { %168 = vmatpush.bf16.msra.mxu0 %v411_v4  ;;  %v422_v29 = vld [vmem:[%s574_s3] sm:$0xff] }
   0xb   :  { %182 = vmatpush.bf16.msra.mxu1 %v419_v5  ;;  %v440_v30 = vld [vmem:[%s575_s2] ss:$0 sm:$0xff] }
   0xc   :  { %276 = vmatpush.bf16.msra.mxu2 %v427_v10  ;;  %v441_v48 = vld [vmem:[%s577_s4] ss:$0 sm:$0xff] }
   0xe   :  { %169 = vmatpush.bf16.msra.mxu0 %v410_v8 }
   0xf   :  { %183 = vmatpush.bf16.msra.mxu1 %v418_v9 }
  0x10   :  { %277 = vmatpush.bf16.msra.mxu2 %v426_v25 }
  0x12   :  { %170 = vmatpush.bf16.msra.mxu0 %v409_v11 }
  0x13   :  { %184 = vmatpush.bf16.msra.mxu1 %v417_v12 }
  0x14   :  { %278 = vmatpush.bf16.msra.mxu2 %v425_v26 }
  0x16   :  { %171 = vmatpush.bf16.msra.mxu0 %v408_v13 }
  0x17   :  { %185 = vmatpush.bf16.msra.mxu1 %v416_v14 }
  0x18   :  { %279 = vmatpush.bf16.msra.mxu2 %v424_v27 }
  0x1a   :  { %172 = vmatpush.bf16.msra.mxu0 %v407_v15 }
  0x1b   :  { %186 = vmatpush.bf16.msra.mxu1 %v415_v16 }
  0x1c   :  { %280 = vmatpush.bf16.msra.mxu2 %v423_v28 }
  0x1e   :  { %173 = vmatpush.bf16.msra.mxu0 %v406_v17 }
  0x1f   :  { %187 = vmatpush.bf16.msra.mxu1 %v414_v18 }
  0x20   :  { %281 = vmatpush.bf16.msra.mxu2 %v422_v29 }
  0x21   :  { %174 = vmatmul.bf16.vlgmr.msra.gmra.mxu0 %v303_v23 }
  0x22   :  { %188 = vmatmul.bf16.vlgmr.msra.gmra.mxu1 %v307_v24 }
  0x9e   :  { %v175_v31 = vpop.f32.mrf.mxu0 }
  0x9f   :  { %v189_v32 = vpop.f32.mrf.mxu1  ;;  %v176_v33 = vadd.f32 %v440_v30, %v175_v31 }
  0xa1   :  { %v190_v34 = vadd.f32 %v189_v32, %v176_v33 }
  0xa3   :  { %v194_v36 = vmax.f32 %v190_v34, 0.0 }
  0xa5   :  { %v196_v40 = vpack.c.bf16 %v194_v36, %v194_v36 }
  0xa6   :  { %v177_v35 = vpop.f32.mrf.mxu0 }
  0xa7   :  { %v178_v37 = vadd.f32 %v440_v30, %v177_v35  ;;  %v191_v38 = vpop.f32.mrf.mxu1  ;;  %v222_v44 = vunpack.c.l.b16 %v196_v40 }
  0xa9   :  { %v192_v39 = vadd.f32 %v191_v38, %v178_v37 }
  0xab   :  { %v195_v41 = vmax.f32 %v192_v39, 0.0 }
  0xad   :  { %v197_v42 = vpack.c.bf16 %v195_v41, %v195_v41  ;;  %v433_v43 = vpack.c.bf16 %v195_v41, %v194_v36 }
  0xaf   :  { %434 = vst [vmem:[%s578_s6] sm:$0xff] %v433_v43   ;;  %v223_v45 = vunpack.c.l.b16 %v197_v42 }
  0xb1   :  { %v224_v46 = vpack.c.b16 %v223_v45, %v222_v44 }
  0xb3   :  { %282 = vmatmul.bf16.vlgmr.msra.gmra.mxu2 %v224_v46 }
 0x136   :  { %v283_v47 = vpop.f32.mrf.mxu2 }
 0x137   :  { %v284_v50 = vadd.f32 %v441_v48, %v283_v47 }
 0x13e   :  { %v285_v49 = vpop.f32.mrf.mxu2 }
 0x13f   :  { %v286_v51 = vadd.f32 %v441_v48, %v285_v49 }
 0x141   :  { %v438_v52 = vpack.c.bf16 %v286_v51, %v284_v50 }
 0x143   :  { %439 = vst [vmem:[%s579_s5] sm:$0xff] %v438_v52  }

</bundles_post_ra>
